<compile_context>
chip_gen: v7x
topology: tpu7x:2x2x1
jax: 0.10.0
libtpu: 0.0.40
codegen_flags: <defaults>
</compile_context>

<pallas_src>
import functools

import jax
import jax.numpy as jnp
from jax.experimental import pallas as pl
from jax.experimental.pallas import tpu as pltpu


def euler_gcn_kernel(adj_ref, x_ref, w1_ref, b1_ref, w2_ref, b2_ref,
                     w3_ref, b3_ref, out_ref, z_scratch, *, t_block):
    """One invocation processes t_block timesteps.

    adj_ref:   (t_block*N, N) normalized adjacencies, timesteps stacked on rows
    x_ref:     (N, x_dim)     static node features
    out_ref:   (t_block*N, z_dim) output slab for this block
    z_scratch: (t_block*N, h_dim) f32 VMEM slab holding tanh(Z_t) for all t
    """
    f32 = jnp.float32
    n = x_ref.shape[0]
    cdt = adj_ref.dtype                         # compute (dot-operand) dtype

    # --- Hoisted, time-invariant feature transform: once per block. ---
    xw1 = jnp.dot(x_ref[...], w1_ref[...], preferred_element_type=f32)       # (N, h) f32
    xw1_c = xw1.astype(cdt)
    b1 = b1_ref[...]                                                          # (1, h) f32
    b2 = b2_ref[...]                                                          # (1, h) f32

    # --- First propagation + W2 transform for ALL timesteps at once. ---
    # adj_all rows t*N:(t+1)*N are A_hat_t, and xw1 is time-invariant, so one
    # stacked dot computes H1 for every timestep in the block.
    adj_all = adj_ref[...]                                                    # (tB*N, N)
    h1_all = jnp.dot(adj_all, xw1_c, preferred_element_type=f32) + b1         # (tB*N, h) f32
    h1_all = jnp.maximum(h1_all, 0.0)                                         # relu in f32
    hw2_all = jnp.dot(h1_all.astype(cdt), w2_ref[...],
                      preferred_element_type=f32)                             # (tB*N, h) f32
    hw2_c = hw2_all.astype(cdt)

    # --- Second propagation: needs per-timestep adjacency. Static unroll;
    #     tanh(z_t) goes straight into the VMEM slab (no list / concat). ---
    for t in range(t_block):
        adj_t = adj_all[t * n:(t + 1) * n, :]                                 # (N, N)
        z_t = jnp.dot(adj_t, hw2_c[t * n:(t + 1) * n, :],
                      preferred_element_type=f32) + b2                        # (N, h) f32
        z_scratch[pl.ds(t * n, n), :] = jnp.tanh(z_t)

    # --- Recurrent (lstm=False => Linear): one stacked matmul, one store. ---
    out = jnp.dot(z_scratch[...].astype(cdt), w3_ref[...],
                  preferred_element_type=f32) + b3_ref[...]                   # (tB*N, z)
    out_ref[...] = out.astype(out_ref.dtype)


def _default_t_block(T):
    """Give the 'parallel' grid axis >= 2 blocks only on multi-TC chips (v7x)."""
    dev = jax.devices()[0]
    kind = getattr(dev, "device_kind", "") or ""
    n_tc = getattr(dev, "num_cores", 2 if "v7" in kind.lower() else 1)
    if n_tc and n_tc >= 2:
        for nb in range(n_tc, T + 1):
            if T % nb == 0:
                return T // nb
        return 1
    return T                                    # single TC: collapse the grid


def euler_gcn_forward(adjs, x, params, *, t_block=None,
                      compute_dtype=jnp.float32):
    """adjs: (T, N, N) normalized adjacency stack; x: (N, x_dim)."""
    T, N, _ = adjs.shape
    x_dim = x.shape[1]
    w1, b1, w2, b2, w3, b3 = params
    h_dim = w1.shape[1]
    z_dim = w3.shape[1]

    if t_block is None:
        t_block = _default_t_block(T)
    assert T % t_block == 0
    n_blocks = T // t_block

    cdt = jnp.dtype(compute_dtype)
    itemsize = cdt.itemsize

    # Narrow the DMA-dominant operands in the WRAPPER (halves HBM bytes of the
    # O(T*N^2) adjacency stream when compute_dtype=bf16). Timesteps are stacked
    # on rows so the kernel sees a single (t_block*N, N) matmul operand.
    # NOTE: bf16 adjacency trades parity with the f32 PyTorch module for DMA
    # bytes; default compute_dtype=f32 keeps exact-path numerics.
    adjs_2d = adjs.reshape(T * N, N).astype(cdt)
    x_c, w1_c, w2_c, w3_c = (a.astype(cdt) for a in (x, w1, w2, w3))
    b1_f, b2_f, b3_f = (b.astype(jnp.float32) for b in (b1, b2, b3))  # f32 elementwise

    # VMEM budget: double-buffered input/output blocks + the f32 scratch slab.
    blk_bytes = (2 * t_block * N * N * itemsize
                 + 2 * (N * x_dim + x_dim * h_dim + h_dim * h_dim
                        + h_dim * z_dim) * itemsize
                 + 2 * (2 * h_dim + z_dim) * 4
                 + 2 * t_block * N * z_dim * 4
                 + t_block * N * h_dim * 4)
    vmem_limit = int(min(max(2 * blk_bytes + (2 << 20), 32 << 20), 64 << 20))

    # Advisory cost estimate (whole call).
    flops = (2 * n_blocks * N * x_dim * h_dim        # X @ W1 (once per block)
             + 2 * T * N * N * h_dim                 # A_hat @ (X W1)
             + 2 * T * N * h_dim * h_dim             # H1 @ W2
             + 2 * T * N * N * h_dim                 # A_hat @ (H1 W2)
             + 2 * T * N * h_dim * z_dim)            # tanh(Z) @ W3
    bytes_accessed = (T * N * N * itemsize
                      + n_blocks * (N * x_dim + x_dim * h_dim + h_dim * h_dim
                                    + h_dim * z_dim) * itemsize
                      + n_blocks * (2 * h_dim + z_dim) * 4
                      + T * N * z_dim * 4)

    kernel = functools.partial(euler_gcn_kernel, t_block=t_block)

    out2d = pl.pallas_call(
        kernel,
        out_shape=jax.ShapeDtypeStruct((T * N, z_dim), jnp.float32),
        grid=(n_blocks,),
        in_specs=[
            pl.BlockSpec((t_block * N, N), lambda i: (i, 0)),   # adjacency block (stacked)
            pl.BlockSpec((N, x_dim), lambda i: (0, 0)),         # static features
            pl.BlockSpec((x_dim, h_dim), lambda i: (0, 0)),     # W1
            pl.BlockSpec((1, h_dim), lambda i: (0, 0)),         # b1 (f32)
            pl.BlockSpec((h_dim, h_dim), lambda i: (0, 0)),     # W2
            pl.BlockSpec((1, h_dim), lambda i: (0, 0)),         # b2 (f32)
            pl.BlockSpec((h_dim, z_dim), lambda i: (0, 0)),     # W3
            pl.BlockSpec((1, z_dim), lambda i: (0, 0)),         # b3 (f32)
        ],
        out_specs=pl.BlockSpec((t_block * N, z_dim), lambda i: (i, 0)),
        scratch_shapes=[pltpu.VMEM((t_block * N, h_dim), jnp.float32)],
        # T-blocks are fully independent (xw1 recomputed per block, no carried
        # state) => safe to shard across TensorCores on v7x.
        compiler_params=pltpu.CompilerParams(
            dimension_semantics=("parallel",),
            vmem_limit_bytes=vmem_limit),
        cost_estimate=pl.CostEstimate(flops=flops,
                                      transcendentals=T * N * h_dim,
                                      bytes_accessed=bytes_accessed),
    )(adjs_2d, x_c, w1_c, b1_f, w2_c, b2_f, w3_c, b3_f)

    return out2d.reshape(T, N, z_dim)


def normalized_adjacency(edge_index, n):
    """PyG GCNConv(add_self_loops=True, weights=None) normalization, dense."""
    src, dst = edge_index[0], edge_index[1]
    a = jnp.zeros((n, n), jnp.float32).at[dst, src].add(1.0)
    a = a + jnp.eye(n, dtype=jnp.float32)                  # self loops, weight 1
    deg = a.sum(axis=1)
    dinv = jnp.where(deg > 0, 1.0 / jnp.sqrt(deg), 0.0)
    return dinv[:, None] * a * dinv[None, :]


def reference_forward(adjs, x, params):
    w1, b1, w2, b2, w3, b3 = params
    def step(a):
        h1 = jnp.maximum(a @ (x @ w1) + b1, 0.0)
        z = a @ (h1 @ w2) + b2
        return jnp.tanh(z) @ w3 + b3
    return jax.vmap(step)(adjs)


if __name__ == "__main__":
    # Small shapes consistent with the module's forward.
    T, N = 3, 16          # timesteps, nodes
    x_dim, h_dim, z_dim = 8, 32, 16
    n_edges = 40

    key = jax.random.PRNGKey(0)
    k_x, k_ei, k1, k2, k3, kb3 = jax.random.split(key, 6)

    # Static node features (dynamic_feats=False => same x every timestep).
    x = jax.random.normal(k_x, (N, x_dim), jnp.float32)

    # Deterministic random edge lists per timestep (mask_fn(i) analogue).
    ei_keys = jax.random.split(k_ei, T)
    adjs = jnp.stack([
        normalized_adjacency(
            jax.random.randint(ei_keys[t], (2, n_edges), 0, N), N)
        for t in range(T)
    ])  # (T, N, N)

    # Deterministic parameter init (GCNConv lin weights + zero biases; Linear w/ bias).
    w1 = jax.random.normal(k1, (x_dim, h_dim), jnp.float32) * 0.2
    b1 = jnp.zeros((1, h_dim), jnp.float32)
    w2 = jax.random.normal(k2, (h_dim, h_dim), jnp.float32) * 0.2
    b2 = jnp.zeros((1, h_dim), jnp.float32)
    w3 = jax.random.normal(k3, (h_dim, z_dim), jnp.float32) * 0.2
    b3 = jax.random.normal(kb3, (1, z_dim), jnp.float32) * 0.1
    params = (w1, b1, w2, b2, w3, b3)

    ref = reference_forward(adjs, x, params)

    # f32 path (matches the PyTorch module's numerics).
    out = euler_gcn_forward(adjs, x, params)
    out = jax.block_until_ready(out)
    assert out.shape == (T, N, z_dim)
    assert jnp.allclose(out, ref, atol=2e-4, rtol=2e-4)

    # Multi-block path (exercises n_blocks > 1 / megacore sharding correctness).
    out_blk = euler_gcn_forward(adjs, x, params, t_block=1)
    out_blk = jax.block_until_ready(out_blk)
    assert jnp.allclose(out_blk, ref, atol=2e-4, rtol=2e-4)

    # bf16 dot-operand path: adjacency/x/weights narrowed in the wrapper (halved
    # DMA bytes), f32 MXU accumulation and f32 elementwise (v5e-safe). Loose
    # tolerance vs the f32 reference since bf16-adjacency error compounds across
    # the two propagations.
    out_bf16 = euler_gcn_forward(adjs, x, params, compute_dtype=jnp.bfloat16)
    out_bf16 = jax.block_until_ready(out_bf16)
    assert jnp.allclose(out_bf16, ref, atol=1e-1, rtol=1e-1)

    print("KERNEL_OK")
</pallas_src>

<mosaic_0001>
module attributes {stable_mosaic.version = 11 : i64} {
  func.func @euler_gcn_kernel(%arg0: i32, %arg1: memref<48x16xf32, #tpu.memory_space<vmem>>, %arg2: memref<16x8xf32, #tpu.memory_space<vmem>>, %arg3: memref<8x32xf32, #tpu.memory_space<vmem>>, %arg4: memref<1x32xf32, #tpu.memory_space<vmem>>, %arg5: memref<32x32xf32, #tpu.memory_space<vmem>>, %arg6: memref<1x32xf32, #tpu.memory_space<vmem>>, %arg7: memref<32x16xf32, #tpu.memory_space<vmem>>, %arg8: memref<1x16xf32, #tpu.memory_space<vmem>>, %arg9: memref<48x16xf32, #tpu.memory_space<vmem>>, %arg10: memref<48x32xf32, #tpu.memory_space<vmem>>) attributes {dimension_semantics = [#tpu.dimension_semantics<parallel>], iteration_bounds = array<i64: 1>, scalar_prefetch = 0 : i64, scratch_operands = 1 : i64, tpu.core_type = #tpu.core_type<tc>, window_params = [{transform_indices = @transform_0, window_bounds = array<i64: 48, 16>}, {pipeline_mode = #tpu.pipeline_mode<synchronous>, transform_indices = @transform_1, window_bounds = array<i64: 16, 8>}, {pipeline_mode = #tpu.pipeline_mode<synchronous>, transform_indices = @transform_2, window_bounds = array<i64: 8, 32>}, {pipeline_mode = #tpu.pipeline_mode<synchronous>, transform_indices = @transform_3, window_bounds = array<i64: 1, 32>}, {pipeline_mode = #tpu.pipeline_mode<synchronous>, transform_indices = @transform_4, window_bounds = array<i64: 32, 32>}, {pipeline_mode = #tpu.pipeline_mode<synchronous>, transform_indices = @transform_5, window_bounds = array<i64: 1, 32>}, {pipeline_mode = #tpu.pipeline_mode<synchronous>, transform_indices = @transform_6, window_bounds = array<i64: 32, 16>}, {pipeline_mode = #tpu.pipeline_mode<synchronous>, transform_indices = @transform_7, window_bounds = array<i64: 1, 16>}, {transform_indices = @transform_8, window_bounds = array<i64: 48, 16>}]} {
    %c0 = arith.constant 0 : index
    %c0_0 = arith.constant 0 : index
    %0 = vector.load %arg2[%c0, %c0_0] : memref<16x8xf32, #tpu.memory_space<vmem>>, vector<16x8xf32>
    %c0_1 = arith.constant 0 : index
    %c0_2 = arith.constant 0 : index
    %1 = vector.load %arg3[%c0_1, %c0_2] : memref<8x32xf32, #tpu.memory_space<vmem>>, vector<8x32xf32>
    %cst = arith.constant dense<0.000000e+00> : vector<16x32xf32>
    %2 = tpu.matmul %0, %1, %cst {dimension_numbers = #tpu.dot_dimension_numbers<[1], [0], [0], [1], [0, 0, 1, 1], [], []>} : vector<16x8xf32>, vector<8x32xf32>, vector<16x32xf32> -> vector<16x32xf32>
    %c0_3 = arith.constant 0 : index
    %c0_4 = arith.constant 0 : index
    %3 = vector.load %arg4[%c0_3, %c0_4] : memref<1x32xf32, #tpu.memory_space<vmem>>, vector<1x32xf32>
    %c0_5 = arith.constant 0 : index
    %c0_6 = arith.constant 0 : index
    %4 = vector.load %arg6[%c0_5, %c0_6] : memref<1x32xf32, #tpu.memory_space<vmem>>, vector<1x32xf32>
    %c0_7 = arith.constant 0 : index
    %c0_8 = arith.constant 0 : index
    %5 = vector.load %arg1[%c0_7, %c0_8] : memref<48x16xf32, #tpu.memory_space<vmem>>, vector<48x16xf32>
    %cst_9 = arith.constant dense<0.000000e+00> : vector<48x32xf32>
    %6 = tpu.matmul %5, %2, %cst_9 {dimension_numbers = #tpu.dot_dimension_numbers<[1], [0], [0], [1], [0, 0, 1, 1], [], []>} : vector<48x16xf32>, vector<16x32xf32>, vector<48x32xf32> -> vector<48x32xf32>
    %7 = vector.broadcast %3 : vector<1x32xf32> to vector<48x32xf32>
    %8 = arith.addf %6, %7 : vector<48x32xf32>
    %cst_10 = arith.constant 0.000000e+00 : f32
    %9 = vector.broadcast %cst_10 : f32 to vector<48x32xf32>
    %10 = arith.maximumf %8, %9 : vector<48x32xf32>
    %c0_11 = arith.constant 0 : index
    %c0_12 = arith.constant 0 : index
    %11 = vector.load %arg5[%c0_11, %c0_12] : memref<32x32xf32, #tpu.memory_space<vmem>>, vector<32x32xf32>
    %cst_13 = arith.constant dense<0.000000e+00> : vector<48x32xf32>
    %12 = tpu.matmul %10, %11, %cst_13 {dimension_numbers = #tpu.dot_dimension_numbers<[1], [0], [0], [1], [0, 0, 1, 1], [], []>} : vector<48x32xf32>, vector<32x32xf32>, vector<48x32xf32> -> vector<48x32xf32>
    %13 = vector.extract_strided_slice %5 {offsets = [0, 0], sizes = [16, 16], strides = [1, 1]} : vector<48x16xf32> to vector<16x16xf32>
    %14 = vector.extract_strided_slice %12 {offsets = [0, 0], sizes = [16, 32], strides = [1, 1]} : vector<48x32xf32> to vector<16x32xf32>
    %cst_14 = arith.constant dense<0.000000e+00> : vector<16x32xf32>
    %15 = tpu.matmul %13, %14, %cst_14 {dimension_numbers = #tpu.dot_dimension_numbers<[1], [0], [0], [1], [0, 0, 1, 1], [], []>} : vector<16x16xf32>, vector<16x32xf32>, vector<16x32xf32> -> vector<16x32xf32>
    %16 = vector.broadcast %4 : vector<1x32xf32> to vector<16x32xf32>
    %17 = arith.addf %15, %16 : vector<16x32xf32>
    %18 = math.tanh %17 : vector<16x32xf32>
    %c0_15 = arith.constant 0 : index
    %c0_16 = arith.constant 0 : index
    %19 = vector.load %arg10[%c0_15, %c0_16] : memref<48x32xf32, #tpu.memory_space<vmem>>, vector<16x32xf32>
    tpu.vector_store %arg10[%c0_15, %c0_16], %18 {strides = array<i32>} : memref<48x32xf32, #tpu.memory_space<vmem>>, vector<16x32xf32>,
    %20 = vector.extract_strided_slice %5 {offsets = [16, 0], sizes = [16, 16], strides = [1, 1]} : vector<48x16xf32> to vector<16x16xf32>
    %21 = vector.extract_strided_slice %12 {offsets = [16, 0], sizes = [16, 32], strides = [1, 1]} : vector<48x32xf32> to vector<16x32xf32>
    %cst_17 = arith.constant dense<0.000000e+00> : vector<16x32xf32>
    %22 = tpu.matmul %20, %21, %cst_17 {dimension_numbers = #tpu.dot_dimension_numbers<[1], [0], [0], [1], [0, 0, 1, 1], [], []>} : vector<16x16xf32>, vector<16x32xf32>, vector<16x32xf32> -> vector<16x32xf32>
    %23 = vector.broadcast %4 : vector<1x32xf32> to vector<16x32xf32>
    %24 = arith.addf %22, %23 : vector<16x32xf32>
    %25 = math.tanh %24 : vector<16x32xf32>
    %c16 = arith.constant 16 : index
    %c0_18 = arith.constant 0 : index
    %26 = vector.load %arg10[%c16, %c0_18] : memref<48x32xf32, #tpu.memory_space<vmem>>, vector<16x32xf32>
    tpu.vector_store %arg10[%c16, %c0_18], %25 {strides = array<i32>} : memref<48x32xf32, #tpu.memory_space<vmem>>, vector<16x32xf32>,
    %27 = vector.extract_strided_slice %5 {offsets = [32, 0], sizes = [16, 16], strides = [1, 1]} : vector<48x16xf32> to vector<16x16xf32>
    %28 = vector.extract_strided_slice %12 {offsets = [32, 0], sizes = [16, 32], strides = [1, 1]} : vector<48x32xf32> to vector<16x32xf32>
    %cst_19 = arith.constant dense<0.000000e+00> : vector<16x32xf32>
    %29 = tpu.matmul %27, %28, %cst_19 {dimension_numbers = #tpu.dot_dimension_numbers<[1], [0], [0], [1], [0, 0, 1, 1], [], []>} : vector<16x16xf32>, vector<16x32xf32>, vector<16x32xf32> -> vector<16x32xf32>
    %30 = vector.broadcast %4 : vector<1x32xf32> to vector<16x32xf32>
    %31 = arith.addf %29, %30 : vector<16x32xf32>
    %32 = math.tanh %31 : vector<16x32xf32>
    %c32 = arith.constant 32 : index
    %c0_20 = arith.constant 0 : index
    %33 = vector.load %arg10[%c32, %c0_20] : memref<48x32xf32, #tpu.memory_space<vmem>>, vector<16x32xf32>
    tpu.vector_store %arg10[%c32, %c0_20], %32 {strides = array<i32>} : memref<48x32xf32, #tpu.memory_space<vmem>>, vector<16x32xf32>,
    %c0_21 = arith.constant 0 : index
    %c0_22 = arith.constant 0 : index
    %34 = vector.load %arg10[%c0_21, %c0_22] : memref<48x32xf32, #tpu.memory_space<vmem>>, vector<48x32xf32>
    %c0_23 = arith.constant 0 : index
    %c0_24 = arith.constant 0 : index
    %35 = vector.load %arg7[%c0_23, %c0_24] : memref<32x16xf32, #tpu.memory_space<vmem>>, vector<32x16xf32>
    %cst_25 = arith.constant dense<0.000000e+00> : vector<48x16xf32>
    %36 = tpu.matmul %34, %35, %cst_25 {dimension_numbers = #tpu.dot_dimension_numbers<[1], [0], [0], [1], [0, 0, 1, 1], [], []>} : vector<48x32xf32>, vector<32x16xf32>, vector<48x16xf32> -> vector<48x16xf32>
    %c0_26 = arith.constant 0 : index
    %c0_27 = arith.constant 0 : index
    %37 = vector.load %arg8[%c0_26, %c0_27] : memref<1x16xf32, #tpu.memory_space<vmem>>, vector<1x16xf32>
    %38 = vector.broadcast %37 : vector<1x16xf32> to vector<48x16xf32>
    %39 = arith.addf %36, %38 : vector<48x16xf32>
    %c0_28 = arith.constant 0 : index
    %c0_29 = arith.constant 0 : index
    %40 = vector.load %arg9[%c0_28, %c0_29] : memref<48x16xf32, #tpu.memory_space<vmem>>, vector<48x16xf32>
    tpu.vector_store %arg9[%c0_28, %c0_29], %39 {strides = array<i32>} : memref<48x16xf32, #tpu.memory_space<vmem>>, vector<48x16xf32>,
    return
  }
  func.func @transform_0(%arg0: i32) -> (i32, i32) {
    %c0_i32 = arith.constant 0 : i32
    %c0_i32_0 = arith.constant 0 : i32
    return %arg0, %c0_i32 : i32, i32
  }
  func.func @transform_1(%arg0: i32) -> (i32, i32) {
    %c0_i32 = arith.constant 0 : i32
    %c0_i32_0 = arith.constant 0 : i32
    %c0_i32_1 = arith.constant 0 : i32
    return %c0_i32, %c0_i32_0 : i32, i32
  }
  func.func @transform_2(%arg0: i32) -> (i32, i32) {
    %c0_i32 = arith.constant 0 : i32
    %c0_i32_0 = arith.constant 0 : i32
    %c0_i32_1 = arith.constant 0 : i32
    return %c0_i32, %c0_i32_0 : i32, i32
  }
  func.func @transform_3(%arg0: i32) -> (i32, i32) {
    %c0_i32 = arith.constant 0 : i32
    %c0_i32_0 = arith.constant 0 : i32
    %c0_i32_1 = arith.constant 0 : i32
    return %c0_i32, %c0_i32_0 : i32, i32
  }
  func.func @transform_4(%arg0: i32) -> (i32, i32) {
    %c0_i32 = arith.constant 0 : i32
    %c0_i32_0 = arith.constant 0 : i32
    %c0_i32_1 = arith.constant 0 : i32
    return %c0_i32, %c0_i32_0 : i32, i32
  }
  func.func @transform_5(%arg0: i32) -> (i32, i32) {
    %c0_i32 = arith.constant 0 : i32
    %c0_i32_0 = arith.constant 0 : i32
    %c0_i32_1 = arith.constant 0 : i32
    return %c0_i32, %c0_i32_0 : i32, i32
  }
  func.func @transform_6(%arg0: i32) -> (i32, i32) {
    %c0_i32 = arith.constant 0 : i32
    %c0_i32_0 = arith.constant 0 : i32
    %c0_i32_1 = arith.constant 0 : i32
    return %c0_i32, %c0_i32_0 : i32, i32
  }
  func.func @transform_7(%arg0: i32) -> (i32, i32) {
    %c0_i32 = arith.constant 0 : i32
    %c0_i32_0 = arith.constant 0 : i32
    %c0_i32_1 = arith.constant 0 : i32
    return %c0_i32, %c0_i32_0 : i32, i32
  }
  func.func @transform_8(%arg0: i32) -> (i32, i32) {
    %c0_i32 = arith.constant 0 : i32
    %c0_i32_0 = arith.constant 0 : i32
    return %arg0, %c0_i32 : i32, i32
  }
}

</mosaic_0001>

<bundles_post_ra>
// kernel: tpu_custom_call.1
= control target key start
LH: loop header
LB: loop body
LE: loop exit
PB: predicated region body
PF: predicated region fallthrough
CT: control target
= control target key end

     0   :  { %vm32_vm0 = vcmask 64512   ;;  %vm128_vm1 = vcmask 130048   ;;  %vm252_vm2 = vcmask 261120   ;;  %s1099_s2 = inlined_call_operand.vmem [shape: f32[8,32], index: 2, kind: input, shape index: {}]   ;;  %s1100_s1 = inlined_call_operand.vmem [shape: f32[16,8], index: 1, kind: input, shape index: {}]   ;;  %s1101_s0 = inlined_call_operand.vmem [shape: f32[48,16], index: 0, kind: input, shape index: {}]   ;;  %s1102_s4 = inlined_call_operand.vmem [shape: f32[32,32], index: 4, kind: input, shape index: {}]   ;;  %s1103_s3 = inlined_call_operand.vmem [shape: f32[1,32], index: 3, kind: input, shape index: {}]   ;;  %s1104_s6 = inlined_call_operand.vmem [shape: f32[32,16], index: 6, kind: input, shape index: {}]   ;;  %s1105_s5 = inlined_call_operand.vmem [shape: f32[1,32], index: 5, kind: input, shape index: {}]   ;;  %s1106_s7 = inlined_call_operand.vmem [shape: f32[1,16], index: 7, kind: input, shape index: {}]   ;;  %s1107_s8 = inlined_call_operand.vmem [shape: f32[48,16], index: 8, kind: output, shape index: {}]  }
   0x1   :  { %v31_v0 = vld [vmem:[%s1099_s2] sm:$0xff]  ;;  %v30_v2 = vld [vmem:[%s1100_s1 + $0x8] sm:$0xff]  ;;  %v118_v13 = vld [vmem:[%s1101_s0 + $0x10] sm:$0xff] }
   0x2   :  { %v29_v1 = vld [vmem:[%s1100_s1] sm:$0xff]  ;;  %821 = vmatprep.subr.mxu0 %v31_v0  ;;  %v249_v6 = vld [vmem:[%s1102_s4 + $0x8] sm:$0xff]  ;;  %v119_v14 = vld [vmem:[%s1101_s0 + $0x18] sm:$0xff] }
   0x3   :  { %823 = vmatprep.mubr.msk.f32.mxu0 %vm32_vm0, %v29_v1  ;;  %822 = vmatpush3.msra.mxu0 %v31_v0  ;;  %v116_v3 = vld [vmem:[%s1101_s0] sm:$0xff]  ;;  %v117_v11 = vld [vmem:[%s1101_s0 + $0x8] sm:$0xff]  ;;  %v250_v15 = vld [vmem:[%s1102_s4 + $0x10] sm:$0xff] }
   0x4   :  { %824 = vmatmul.mubr.msk.f32.vlgmr.msra.gmra.mrb[0].mxu0 %vm32_vm0, %v30_v2  ;;  %v120_v4 = vld [vmem:[%s1101_s0 + $0x20] sm:$0xff]  ;;  %v121_v12 = vld [vmem:[%s1101_s0 + $0x28] sm:$0xff]  ;;  %v251_v16 = vld [vmem:[%s1102_s4 + $0x18] sm:$0xff] }
   0x5   :  { %830 = vmatprep.mubr.msk.f32.mxu0 %vm128_vm1, %v116_v3  ;;  %836 = vmatprep.mubr.msk.f32.mxu1 %vm128_vm1, %v120_v4  ;;  %v248_v5 = vld [vmem:[%s1102_s4] sm:$0xff]  ;;  %v902_v17 = vpack.c.bf16 %v251_v16, %v250_v15  ;;  %v616_v47 = vld [vmem:[%s1104_s6 + $0x8] sm:$0xff]  ;;  %v617_v49 = vld [vmem:[%s1104_s6 + $0x10] sm:$0xff] }
   0x6   :  { %v898_v10 = vpack.c.bf16 %v249_v6, %v248_v5  ;;  %v751_v18 = vld [vmem:[%s1103_s3] ss:$0 sm:$0xff]  ;;  %v618_v50 = vld [vmem:[%s1104_s6 + $0x18] sm:$0xff] }
   0x7   :  { %v615_v46 = vld [vmem:[%s1104_s6] sm:$0xff]  ;;  %v922_v51 = vpack.c.bf16 %v618_v50, %v617_v49 }
   0x8   :  { %v918_v48 = vpack.c.bf16 %v616_v47, %v615_v46  ;;  %v764_v52 = vld [vmem:[%s1105_s5] ss:$0 sm:$0xff] }
  0xd7   :  { %v825_v7 = vpop.f32.mrb[0].mxu0 }
  0xd8   :  { %v105_v8 = vpop.f32.mrb[1].mxu0 }
  0xd9   :  { %v894_v9 = vpack.c.bf16 %v825_v7, %v105_v8 }
  0xdb   :  { %895 = vmatprep.subr.bf16.mxu0 %v894_v9  ;;  %926 = vmatprep.subr.bf16.mxu1 %v894_v9 }
  0xdc   :  { %897 = vmatpush3.bf16.msra.mxu0 %v894_v9  ;;  %927 = vmatpush3.bf16.msra.mxu1 %v894_v9 }
  0xdd   :  { %899 = vmatprep.subr.bf16.mxu0 %v898_v10 }
  0xdf   :  { %831 = vmatmul.mubr.msk.f32.vlgmr.msra.gmra.mrb[2].mxu0 %vm128_vm1, %v117_v11  ;;  %837 = vmatmul.mubr.msk.f32.vlgmr.msra.gmra.mrb[0].mxu1 %vm128_vm1, %v121_v12 }
  0xe0   :  { %833 = vmatprep.mubr.msk.f32.mxu0 %vm128_vm1, %v118_v13  ;;  %901 = vmatpush3.bf16.msra.mxu0 %v898_v10 }
  0xe1   :  { %860 = vmatprep.mubr.msk.f32.mxu1 %vm128_vm1, %v116_v3  ;;  %903 = vmatprep.subr.bf16.mxu0 %v902_v17 }
  0xe3   :  { %834 = vmatmul.mubr.msk.f32.gmra.mrb[4].mxu0 %vm128_vm1, %v119_v14 }
  0xe4   :  { %905 = vmatpush3.bf16.msra.mxu0 %v902_v17 }
 0x1b2   :  { %v832_v19 = vpop.f32.mrb[2].mxu0  ;;  %v838_v20 = vpop.f32.mrb[0].mxu1 }
 0x1b3   :  { %v219_v21 = vadd.f32 %v832_v19, %v751_v18  ;;  %v213_v22 = vpop.f32.mrb[3].mxu0  ;;  %v233_v23 = vpop.f32.mrb[1].mxu1  ;;  %v239_v35 = vadd.f32 %v838_v20, %v751_v18 }
 0x1b4   :  { %v214_v24 = vadd.f32 %v751_v18, %v213_v22  ;;  %v234_v27 = vadd.f32 %v751_v18, %v233_v23 }
 0x1b5   :  { %v243_v28 = vmax.f32 %v219_v21, 0.0  ;;  %v247_v36 = vmax.f32 %v239_v35, 0.0 }
 0x1b6   :  { %v242_v25 = vmax.f32 %v214_v24, 0.0  ;;  %v835_v26 = vpop.f32.mrb[4].mxu0  ;;  %v246_v33 = vmax.f32 %v234_v27, 0.0 }
 0x1b7   :  { %v229_v29 = vadd.f32 %v835_v26, %v751_v18  ;;  %v223_v30 = vpop.f32.mrb[5].mxu0 }
 0x1b8   :  { %v224_v31 = vadd.f32 %v751_v18, %v223_v30  ;;  %847 = vmatprep.mubr.msk.f32.mxu0 %vm252_vm2, %v242_v25 }
 0x1b9   :  { %848 = vmatmul.mubr.msk.f32.vlgmr.msra.gmra.mrb[6].mxu0 %vm252_vm2, %v243_v28  ;;  %v245_v34 = vmax.f32 %v229_v29, 0.0 }
 0x1ba   :  { %v244_v32 = vmax.f32 %v224_v31, 0.0 }
 0x1bc   :  { %850 = vmatprep.mubr.msk.f32.mxu0 %vm252_vm2, %v244_v32 }
 0x1bd   :  { %851 = vmatmul.mubr.msk.f32.gmra.mrb[8].mxu0 %vm252_vm2, %v245_v34 }
 0x1be   :  { %853 = vmatprep.mubr.msk.f32.mxu0 %vm252_vm2, %v246_v33 }
 0x1c1   :  { %854 = vmatmul.mubr.msk.f32.gmra.mrb[10].mxu0 %vm252_vm2, %v247_v36 }
 0x1c2   :  { %874 = vmatprep.mubr.msk.f32.mxu0 %vm128_vm1, %v120_v4 }
 0x28c   :  { %v849_v37 = vpop.f32.mrb[6].mxu0 }
 0x28d   :  { %v337_v38 = vpop.f32.mrb[7].mxu0 }
 0x28e   :  { %v906_v39 = vpack.c.bf16 %v849_v37, %v337_v38 }
 0x290   :  { %v852_v40 = vpop.f32.mrb[8].mxu0  ;;  %907 = vmatprep.subr.bf16.mxu1 %v906_v39 }
 0x291   :  { %v347_v41 = vpop.f32.mrb[9].mxu0  ;;  %909 = vmatpush3.bf16.msra.mxu1 %v906_v39 }
 0x292   :  { %v910_v42 = vpack.c.bf16 %v852_v40, %v347_v41 }
 0x294   :  { %v855_v43 = vpop.f32.mrb[10].mxu0  ;;  %911 = vmatprep.subr.bf16.mxu1 %v910_v42  ;;  %861 = vmatmul.mubr.msk.f32.vlgmr.msra.gmra.mrb[2].mxu1 %vm128_vm1, %v117_v11 }
 0x295   :  { %v357_v44 = vpop.f32.mrb[11].mxu0  ;;  %913 = vmatpush3.bf16.msra.mxu1 %v910_v42  ;;  %867 = vmatprep.mubr.msk.f32.mxu1 %vm128_vm1, %v118_v13  ;;  %v771_v13 = vld [vmem:[%s1106_s7] ss:$0 sm:$0xff] }
 0x296   :  { %v914_v45 = vpack.c.bf16 %v855_v43, %v357_v44  ;;  %919 = vmatprep.subr.bf16.mxu1 %v918_v48 }
 0x298   :  { %915 = vmatprep.subr.bf16.mxu0 %v914_v45  ;;  %868 = vmatmul.mubr.msk.f32.vlgmr.msra.gmra.mrb[4].mxu1 %vm128_vm1, %v119_v14 }
 0x299   :  { %917 = vmatpush3.bf16.msra.mxu0 %v914_v45  ;;  %921 = vmatpush3.bf16.msra.mxu1 %v918_v48 }
 0x29a   :  { %923 = vmatprep.subr.bf16.mxu1 %v922_v51 }
 0x29c   :  { %875 = vmatmul.mubr.msk.f32.vlgmr.msra.gmra.mrb[12].mxu0 %vm128_vm1, %v121_v12 }
 0x29d   :  { %925 = vmatpush3.bf16.msra.mxu1 %v922_v51 }
 0x367   :  { %v862_v53 = vpop.f32.mrb[2].mxu1 }
 0x368   :  { %v444_v54 = vadd.f32 %v862_v53, %v764_v52  ;;  %v438_v55 = vpop.f32.mrb[3].mxu1 }
 0x369   :  { %v439_v56 = vadd.f32 %v764_v52, %v438_v55 }
 0x36a   :  { %928 = vtanh.f32 %v444_v54 }
 0x36b   :  { %930 = vtanh.f32 %v439_v56  ;;  %v869_v57 = vpop.f32.mrb[4].mxu1 }
 0x36c   :  { %v523_v58 = vadd.f32 %v869_v57, %v764_v52  ;;  %v517_v59 = vpop.f32.mrb[5].mxu1 }
 0x36d   :  { %v518_v60 = vadd.f32 %v764_v52, %v517_v59 }
 0x36e   :  { %932 = vtanh.f32 %v523_v58 }
 0x36f   :  { %934 = vtanh.f32 %v518_v60  ;;  %v876_v61 = vpop.f32.mrb[12].mxu0 }
 0x370   :  { %v602_v62 = vadd.f32 %v876_v61, %v764_v52  ;;  %v596_v63 = vpop.f32.mrb[13].mxu0 }
 0x371   :  { %v597_v0 = vadd.f32 %v764_v52, %v596_v63 }
 0x372   :  { %936 = vtanh.f32 %v602_v62 }
 0x373   :  { %938 = vtanh.f32 %v597_v0 }
 0x374   :  { %v929_v1 = vpop.eup %928 }
 0x375   :  { %v931_v2 = vpop.eup %930  ;;  %450 = vst.msk [vmem:[#allocation2 + $0x8] sm:$0xff] %vm252_vm2, %v929_v1 }
 0x376   :  { %449 = vst.msk [vmem:[#allocation2] sm:$0xff] %vm252_vm2, %v931_v2 }
 0x378   :  { %v933_v3 = vpop.eup %932 }
 0x379   :  { %v935_v4 = vpop.eup %934  ;;  %529 = vst.msk [vmem:[#allocation2 + $0x18] sm:$0xff] %vm252_vm2, %v933_v3 }
 0x37a   :  { %528 = vst.msk [vmem:[#allocation2 + $0x10] sm:$0xff] %vm252_vm2, %v935_v4 }
 0x37c   :  { %v937_v5 = vpop.eup %936  ;;  %v610_v8 = vld [vmem:[#allocation2 + $0x8] sm:$0xff] }
 0x37d   :  { %v939_v6 = vpop.eup %938  ;;  %608 = vst.msk [vmem:[#allocation2 + $0x28] sm:$0xff] %vm252_vm2, %v937_v5  ;;  %v609_v7 = vld [vmem:[#allocation2] sm:$0xff] }
 0x37e   :  { %607 = vst.msk [vmem:[#allocation2 + $0x20] sm:$0xff] %vm252_vm2, %v939_v6  ;;  %885 = vmatprep.mubr.msk.f32.mxu1 %vm252_vm2, %v609_v7 }
 0x37f   :  { %886 = vmatmul.mubr.msk.f32.vlgmr.msra.gmra.mrb[6].mxu1 %vm252_vm2, %v610_v8 }
 0x380   :  { %v612_v10 = vld [vmem:[#allocation2 + $0x18] sm:$0xff] }
 0x381   :  { %v611_v9 = vld [vmem:[#allocation2 + $0x10] sm:$0xff] }
 0x382   :  { %888 = vmatprep.mubr.msk.f32.mxu1 %vm252_vm2, %v611_v9 }
 0x383   :  { %889 = vmatmul.mubr.msk.f32.gmra.mrb[8].mxu1 %vm252_vm2, %v612_v10 }
 0x384   :  { %v614_v12 = vld [vmem:[#allocation2 + $0x28] sm:$0xff] }
 0x385   :  { %v613_v11 = vld [vmem:[#allocation2 + $0x20] sm:$0xff] }
 0x386   :  { %891 = vmatprep.mubr.msk.f32.mxu1 %vm252_vm2, %v613_v11 }
 0x387   :  { %892 = vmatmul.mubr.msk.f32.gmra.mrb[10].mxu1 %vm252_vm2, %v614_v12 }
 0x452   :  { %v887_v14 = vpop.f32.mrb[6].mxu1 }
 0x453   :  { %v716_v15 = vadd.f32 %v887_v14, %v771_v13  ;;  %v710_v16 = vpop.f32.mrb[7].mxu1 }
 0x454   :  { %v711_v17 = vadd.f32 %v771_v13, %v710_v16 }
 0x455   :  { %740 = vst.msk [vmem:[%s1107_s8 + $0x8] sm:$0xff] %vm128_vm1, %v716_v15 }
 0x456   :  { %739 = vst.msk [vmem:[%s1107_s8] sm:$0xff] %vm128_vm1, %v711_v17  ;;  %v890_v18 = vpop.f32.mrb[8].mxu1 }
 0x457   :  { %v726_v19 = vadd.f32 %v890_v18, %v771_v13  ;;  %v720_v20 = vpop.f32.mrb[9].mxu1 }
 0x458   :  { %v721_v21 = vadd.f32 %v771_v13, %v720_v20 }
 0x459   :  { %742 = vst.msk [vmem:[%s1107_s8 + $0x18] sm:$0xff] %vm128_vm1, %v726_v19 }
 0x45a   :  { %741 = vst.msk [vmem:[%s1107_s8 + $0x10] sm:$0xff] %vm128_vm1, %v721_v21  ;;  %v893_v22 = vpop.f32.mrb[10].mxu1 }
 0x45b   :  { %v736_v23 = vadd.f32 %v893_v22, %v771_v13  ;;  %v730_v24 = vpop.f32.mrb[11].mxu1 }
 0x45c   :  { %v731_v25 = vadd.f32 %v771_v13, %v730_v24 }
 0x45d   :  { %744 = vst.msk [vmem:[%s1107_s8 + $0x28] sm:$0xff] %vm128_vm1, %v736_v23 }
 0x45e   :  { %743 = vst.msk [vmem:[%s1107_s8 + $0x20] sm:$0xff] %vm128_vm1, %v731_v25 }

</bundles_post_ra>
